<compile_context>
chip_gen: v7x
topology: tpu7x:2x2x1
jax: 0.10.0
libtpu: 0.0.40
codegen_flags: <defaults>
</compile_context>

<pallas_src>
import functools

import jax
import jax.numpy as jnp
from jax.experimental import pallas as pl
from jax.experimental.pallas import tpu as pltpu


def _round_up(a, m):
    return ((a + m - 1) // m) * m


def _vmem_ceiling_bytes():
    """Chip-aware usable-VMEM ceiling (physical capacity minus headroom for
    Mosaic internal scratch): ~120 MiB on v5e/v6e, ~56 MiB on v7x."""
    cap = 64 << 20
    try:
        cap = int(pltpu.get_tpu_info().vmem_capacity_bytes)
    except Exception:
        pass  # conservative 64 MiB fallback
    return max(cap - (8 << 20), 32 << 20)


def _patch_proj_kernel(x_ref, w_ref, add_ref, o_ref):
    # x_ref:   (TM, K_pad)     compute dtype; flat token rows (CLS-slot rows zero)
    # w_ref:   (K_pad, D_pad)  compute dtype; constant block (fetched once)
    # add_ref: (TM, D_pad)     compute dtype; per-token bias+pos (+cls) table tile
    # o_ref:   (TM, D_pad)     output dtype
    acc = jnp.dot(x_ref[...], w_ref[...], preferred_element_type=jnp.float32)
    o_ref[...] = (acc + add_ref[...].astype(jnp.float32)).astype(o_ref.dtype)


@functools.partial(
    jax.jit,
    static_argnames=("patch_size", "compute_dtype", "out_dtype", "target_rows"))
def patch_projection(x, conv_w, conv_b, cls_tok, pos_emb, *, patch_size,
                     compute_dtype=jnp.bfloat16, out_dtype=None,
                     target_rows=1024):
    """Exact equivalent of PatchProjection.forward.

    x:       (B, C, H, W)    NCHW
    conv_w:  (dim, C, P, P)  PyTorch Conv2d weight layout
    conv_b:  (dim,)
    cls_tok: (1, 1, dim)
    pos_emb: (1, nb_patch + 1, dim)
    returns: (B, nb_patch + 1, dim) in `out_dtype` (default: x.dtype).
             Matmul runs in `compute_dtype` with f32 accumulation.
    """
    B, C, H, W = x.shape
    dim = conv_w.shape[0]
    P = patch_size
    nh, nw = H // P, W // P
    nb_patch = nh * nw
    T = nb_patch + 1                       # tokens per batch (CLS + patches)
    K = C * P * P
    out_dtype = jnp.dtype(x.dtype if out_dtype is None else out_dtype)

    K_pad = _round_up(K, 128)              # lane-dense LHS loads
    D_pad = _round_up(dim, 128)            # lane-dense output stores
    T8 = _round_up(T, 8)                   # sublane-aligned tokens per batch

    comp_bytes = jnp.dtype(compute_dtype).itemsize
    add_dtype = compute_dtype              # bf16 add: half the DMA/VMEM; f32 epilogue
    add_bytes = jnp.dtype(add_dtype).itemsize
    out_bytes = out_dtype.itemsize

    vmem_ceiling = _vmem_ceiling_bytes()
    headroom = 4 << 20                     # slack for Mosaic internal scratch

    # ---------------- tile geometry (VMEM-budget-driven) ----------------
    # Target ~1024-row M tiles (85%+ of measured HBM roofline); shrink until
    # the honestly-accounted VMEM budget fits the chip's ceiling.  Tiles never
    # straddle a batch partially: either one tile holds r whole batches
    # (small T) or one batch holds an integer number of tiles (large T).
    target = max(128, int(target_rows))
    while True:
        if T8 <= target:
            # One tile = r whole (padded) batches.  r is capped at B: when B
            # is smaller than target//T8 a single tile already covers the
            # entire problem, and padding B further would only DMA zeros.
            r = max(1, min(target // T8, B))
            NPP = T8
            TM = r * NPP
            B_pad = _round_up(B, r)
            add_tiles = 1
        else:
            TM = target
            NPP = _round_up(T, TM)
            B_pad = B
            add_tiles = NPP // TM
        # Budget: double-buffered LHS / add / out tiles + double-buffered
        # (constant-index, fetched-once) weight block.
        vmem_bytes = (2 * TM * K_pad * comp_bytes
                      + 2 * K_pad * D_pad * comp_bytes
                      + 2 * TM * D_pad * add_bytes
                      + 2 * TM * D_pad * out_bytes)
        if vmem_bytes + headroom <= vmem_ceiling or target <= 128:
            break
        target //= 2
    assert vmem_bytes + headroom <= vmem_ceiling, (
        "PatchProjection tile geometry does not fit VMEM; reduce target_rows")
    M_pad = B_pad * NPP

    # ---------------- wrapper glue (XLA) ----------------
    # Patch extraction from NCHW, cast to the MXU compute dtype FIRST so the
    # transpose/pad glue moves half the bytes.  Result is a contiguous
    # row-major (M_pad, K_pad) matrix -> plain contiguous tile DMAs in-kernel.
    # TODO(synk): verify in HLO that transpose+pad fuse into one pass over x;
    # if not, build lhs via lax.dynamic_update_slice into a zeros buffer, or
    # fold the rearrange into the kernel with manual strided DMAs (pl.ANY).
    xc = x.astype(compute_dtype)
    patches = xc.reshape(B, C, nh, P, nw, P)
    patches = jnp.transpose(patches, (0, 2, 4, 1, 3, 5))   # (B, nh, nw, C, P, P)
    patches = patches.reshape(B, nb_patch, K)
    # Zero CLS-slot row at token 0 of every batch; pad to tile geometry;
    # flatten all batches into one M axis.
    lhs = jnp.pad(patches, ((0, B_pad - B), (1, NPP - T), (0, K_pad - K)))
    lhs = lhs.reshape(M_pad, K_pad)

    # Flattened conv weight (K, dim) -> padded (K_pad, D_pad).  Tiny; in a
    # real model this is prepared once at parameter-load time.
    w = conv_w.reshape(dim, K).T
    w = jnp.pad(w, ((0, K_pad - K), (0, D_pad - dim))).astype(compute_dtype)

    # Per-token additive table: row 0 = cls + pos[0]; rows 1..nb_patch =
    # conv bias + pos[1:].  Stored in compute dtype, upcast to f32 on the MXU
    # accumulator in the kernel epilogue.
    add = jnp.concatenate(
        [(cls_tok[0, 0, :] + pos_emb[0, 0, :])[None, :],
         conv_b[None, :] + pos_emb[0, 1:, :]], axis=0)       # (T, dim) f32
    add = jnp.pad(add, ((0, NPP - T), (0, D_pad - dim))).astype(add_dtype)
    if add_tiles == 1 and TM > NPP:
        add = jnp.tile(add, (TM // NPP, 1))                  # (TM, D_pad)

    # ---------------- grid & specs ----------------
    if add_tiles == 1:
        # Small-T: 1-D grid over M tiles; add table fully resident in VMEM.
        num_tiles = M_pad // TM
        grid = (num_tiles,)
        in_specs = [
            pl.BlockSpec((TM, K_pad), lambda i: (i, 0)),
            pl.BlockSpec((K_pad, D_pad), lambda i: (0, 0)),
            pl.BlockSpec((TM, D_pad), lambda i: (0, 0)),
        ]
        out_specs = pl.BlockSpec((TM, D_pad), lambda i: (i, 0))
        dims = ("parallel",)
    else:
        # Large-T: 2-D grid (tile-within-batch OUTER, batch INNER) so the add
        # block index is constant across the inner axis -> each add tile is
        # DMA'd add_tiles times total, not once per grid step.
        grid = (add_tiles, B_pad)
        in_specs = [
            pl.BlockSpec((TM, K_pad), lambda t, b: (b * add_tiles + t, 0)),
            pl.BlockSpec((K_pad, D_pad), lambda t, b: (0, 0)),
            pl.BlockSpec((TM, D_pad), lambda t, b: (t, 0)),
        ]
        out_specs = pl.BlockSpec((TM, D_pad),
                                 lambda t, b: (b * add_tiles + t, 0))
        dims = ("parallel", "arbitrary")     # megacore shards the outer axis

    vmem_limit = int(min(max(vmem_bytes + headroom, 16 << 20), vmem_ceiling))

    # TODO(synk): for very large K (= C * P^2) add a K grid axis with an f32
    # VMEM accumulator (pl.when init/finalize); unnecessary at ViT-like K.
    out_flat = pl.pallas_call(
        _patch_proj_kernel,
        out_shape=jax.ShapeDtypeStruct((M_pad, D_pad), out_dtype),
        grid_spec=pltpu.PrefetchScalarGridSpec(
            num_scalar_prefetch=0,
            grid=grid,
            in_specs=in_specs,
            out_specs=out_specs,
        ),
        compiler_params=pltpu.CompilerParams(
            dimension_semantics=dims,
            vmem_limit_bytes=vmem_limit,
        ),
    )(lhs, w, add)

    # Un-pad: free reshape; slice only if padding was actually needed.
    out = out_flat.reshape(B_pad, NPP, D_pad)
    if (B_pad, NPP, D_pad) != (B, T, dim):
        out = out[:B, :T, :dim]
    return out


def _reference(x, conv_w, conv_b, cls_tok, pos_emb, patch_size):
    """Pure-JAX reference mirroring the PyTorch forward."""
    B = x.shape[0]
    dim = conv_w.shape[0]
    y = jax.lax.conv_general_dilated(
        x, conv_w,
        window_strides=(patch_size, patch_size),
        padding="VALID",
        dimension_numbers=("NCHW", "OIHW", "NCHW"),
    ) + conv_b.reshape(1, dim, 1, 1)
    y = y.reshape(B, dim, -1).transpose(0, 2, 1)              # (B, nb_patch, dim)
    cls_rep = jnp.broadcast_to(cls_tok, (B, 1, dim))
    y = jnp.concatenate([cls_rep, y], axis=1)
    return y + pos_emb


if __name__ == "__main__":
    # Small shapes consistent with the module.
    B, C, H, W = 2, 4, 16, 16
    dim, patch_size = 32, 4
    nb_patch = (H // patch_size) * (W // patch_size)

    key = jax.random.PRNGKey(0)
    k_x, k_w, k_b, k_cls, k_pos = jax.random.split(key, 5)

    x = jax.random.normal(k_x, (B, C, H, W), dtype=jnp.float32)
    conv_w = jax.random.normal(
        k_w, (dim, C, patch_size, patch_size), dtype=jnp.float32) * 0.1
    conv_b = jax.random.normal(k_b, (dim,), dtype=jnp.float32) * 0.1
    cls_tok = jax.random.normal(k_cls, (1, 1, dim), dtype=jnp.float32)
    pos_emb = jax.random.normal(k_pos, (1, nb_patch + 1, dim), dtype=jnp.float32)

    ref = _reference(x, conv_w, conv_b, cls_tok, pos_emb, patch_size)

    # 1) Default bf16-MXU path (small-T / resident add table / 1-D grid).
    out = patch_projection(x, conv_w, conv_b, cls_tok, pos_emb,
                           patch_size=patch_size)
    out = jax.block_until_ready(out)
    assert out.shape == (B, nb_patch + 1, dim)
    assert jnp.allclose(out, ref, atol=5e-2, rtol=5e-2)

    # 2) f32 compute path (bit-closer to the PyTorch reference).
    out32 = patch_projection(x, conv_w, conv_b, cls_tok, pos_emb,
                             patch_size=patch_size, compute_dtype=jnp.float32)
    out32 = jax.block_until_ready(out32)
    assert jnp.allclose(out32, ref, atol=5e-2, rtol=5e-2)

    # 3) bf16 output option (halves writeback on a mem-bound kernel).
    out_bf16 = patch_projection(x, conv_w, conv_b, cls_tok, pos_emb,
                                patch_size=patch_size, out_dtype=jnp.bfloat16)
    out_bf16 = jax.block_until_ready(out_bf16)
    assert out_bf16.dtype == jnp.bfloat16
    assert jnp.allclose(out_bf16.astype(jnp.float32), ref, atol=1e-1, rtol=1e-1)

    # 4) Large-T path (2-D grid with batch-inner axis keeping the add table
    #    resident): patch_size=1 -> 257 tokens, forced small tiles.
    P2 = 1
    nb2 = H * W
    conv_w2 = jax.random.normal(k_w, (dim, C, P2, P2), dtype=jnp.float32) * 0.1
    pos2 = jax.random.normal(k_pos, (1, nb2 + 1, dim), dtype=jnp.float32)
    ref2 = _reference(x, conv_w2, conv_b, cls_tok, pos2, P2)
    out2 = patch_projection(x, conv_w2, conv_b, cls_tok, pos2,
                            patch_size=P2, target_rows=128)
    out2 = jax.block_until_ready(out2)
    assert out2.shape == (B, nb2 + 1, dim)
    assert jnp.allclose(out2, ref2, atol=5e-2, rtol=5e-2)

    print("KERNEL_OK")
</pallas_src>

<mosaic_0001>
module attributes {stable_mosaic.version = 11 : i64} {
  func.func @_patch_proj_kernel(%arg0: i32, %arg1: memref<48x128xbf16, #tpu.memory_space<vmem>>, %arg2: memref<128x128xbf16, #tpu.memory_space<vmem>>, %arg3: memref<48x128xbf16, #tpu.memory_space<vmem>>, %arg4: memref<48x128xf32, #tpu.memory_space<vmem>>) attributes {dimension_semantics = [#tpu.dimension_semantics<parallel>], iteration_bounds = array<i64: 1>, scalar_prefetch = 0 : i64, scratch_operands = 0 : i64, tpu.core_type = #tpu.core_type<tc>, window_params = [{transform_indices = @transform_0, window_bounds = array<i64: 48, 128>}, {pipeline_mode = #tpu.pipeline_mode<synchronous>, transform_indices = @transform_1, window_bounds = array<i64: 128, 128>}, {pipeline_mode = #tpu.pipeline_mode<synchronous>, transform_indices = @transform_2, window_bounds = array<i64: 48, 128>}, {transform_indices = @transform_3, window_bounds = array<i64: 48, 128>}]} {
    %c0 = arith.constant 0 : index
    %c0_0 = arith.constant 0 : index
    %0 = vector.load %arg1[%c0, %c0_0] : memref<48x128xbf16, #tpu.memory_space<vmem>>, vector<48x128xbf16>
    %c0_1 = arith.constant 0 : index
    %c0_2 = arith.constant 0 : index
    %1 = vector.load %arg2[%c0_1, %c0_2] : memref<128x128xbf16, #tpu.memory_space<vmem>>, vector<128x128xbf16>
    %cst = arith.constant dense<0.000000e+00> : vector<48x128xf32>
    %2 = tpu.matmul %0, %1, %cst {dimension_numbers = #tpu.dot_dimension_numbers<[1], [0], [0], [1], [0, 0, 1, 1], [], []>} : vector<48x128xbf16>, vector<128x128xbf16>, vector<48x128xf32> -> vector<48x128xf32>
    %c0_3 = arith.constant 0 : index
    %c0_4 = arith.constant 0 : index
    %3 = vector.load %arg3[%c0_3, %c0_4] : memref<48x128xbf16, #tpu.memory_space<vmem>>, vector<48x128xbf16>
    %4 = arith.extf %3 : vector<48x128xbf16> to vector<48x128xf32>
    %5 = arith.addf %2, %4 : vector<48x128xf32>
    %c0_5 = arith.constant 0 : index
    %c0_6 = arith.constant 0 : index
    %6 = vector.load %arg4[%c0_5, %c0_6] : memref<48x128xf32, #tpu.memory_space<vmem>>, vector<48x128xf32>
    tpu.vector_store %arg4[%c0_5, %c0_6], %5 {strides = array<i32>} : memref<48x128xf32, #tpu.memory_space<vmem>>, vector<48x128xf32>,
    return
  }
  func.func @transform_0(%arg0: i32) -> (i32, i32) {
    %c0_i32 = arith.constant 0 : i32
    %c0_i32_0 = arith.constant 0 : i32
    return %arg0, %c0_i32 : i32, i32
  }
  func.func @transform_1(%arg0: i32) -> (i32, i32) {
    %c0_i32 = arith.constant 0 : i32
    %c0_i32_0 = arith.constant 0 : i32
    %c0_i32_1 = arith.constant 0 : i32
    return %c0_i32, %c0_i32_0 : i32, i32
  }
  func.func @transform_2(%arg0: i32) -> (i32, i32) {
    %c0_i32 = arith.constant 0 : i32
    %c0_i32_0 = arith.constant 0 : i32
    %c0_i32_1 = arith.constant 0 : i32
    return %c0_i32, %c0_i32_0 : i32, i32
  }
  func.func @transform_3(%arg0: i32) -> (i32, i32) {
    %c0_i32 = arith.constant 0 : i32
    %c0_i32_0 = arith.constant 0 : i32
    return %arg0, %c0_i32 : i32, i32
  }
}

</mosaic_0001>

<bundles_post_ra>
// kernel: patch_projection.1
= control target key start
LH: loop header
LB: loop body
LE: loop exit
PB: predicated region body
PF: predicated region fallthrough
CT: control target
= control target key end

     0   :  { %v275_v0 = vmov 0.0   ;;  %vm276_vm0 = vmmov 0   ;;  %s360_s1 = inlined_call_operand.vmem [shape: bf16[128,128], index: 1, kind: input, shape index: {}]   ;;  %s361_s0 = inlined_call_operand.vmem [shape: bf16[48,128], index: 0, kind: input, shape index: {}]   ;;  %s362_s2 = inlined_call_operand.vmem [shape: bf16[48,128], index: 2, kind: input, shape index: {}]   ;;  %s363_s3 = inlined_call_operand.vmem [shape: f32[48,128], index: 3, kind: output, shape index: {}]  }
   0x1   :  { %246 = vmatprep.subr.bf16.mxu1 %v275_v0  ;;  %v264_v1 = vld [vmem:[%s360_s1] sm:$0xff]   ;;  %218 = vmatprep.subr.bf16.mxu0 %v275_v0  ;;  %v265_v2 = vld [vmem:[%s360_s1 + $0x8] sm:$0xff]   ;;  %v266_v3 = vld [vmem:[%s360_s1 + $0x10] sm:$0xff]  }
   0x2   :  { %238 = vmatprep.mubr.msk.bf16.mxu1 %vm276_vm0, %v275_v0  ;;  %234 = vmatprep.mubr.msk.bf16.mxu0 %vm276_vm0, %v275_v0  ;;  %v267_v4 = vld [vmem:[%s360_s1 + $0x18] sm:$0xff]   ;;  %v268_v5 = vld [vmem:[%s360_s1 + $0x20] sm:$0xff]   ;;  %v269_v6 = vld [vmem:[%s360_s1 + $0x28] sm:$0xff]  }
   0x3   :  { %254 = vmatpush3.bf16.msra.mxu1 %v264_v1  ;;  %219 = vmatpush3.bf16.msra.mxu0 %v264_v1  ;;  %v270_v7 = vld [vmem:[%s360_s1 + $0x30] sm:$0xff]   ;;  %v271_v8 = vld [vmem:[%s360_s1 + $0x38] sm:$0xff]   ;;  %v272_v9 = vld [vmem:[%s361_s0 + $0x8] sm:$0xff]  }
   0x4   :  { %247 = vmatprep.subr.bf16.mxu1 %v275_v0  ;;  %220 = vmatprep.subr.bf16.mxu0 %v275_v0  ;;  %v273_v10 = vld [vmem:[%s361_s0] sm:$0xff]   ;;  %v274_v11 = vld [vmem:[%s361_s0 + $0x10] sm:$0xff]   ;;  %v205_v12 = vld [vmem:[%s362_s2 + $0x8] sm:$0xff]  }
   0x5   :  { %v194_v13 = vld [vmem:[%s362_s2] sm:$0xff]   ;;  %v199_v14 = vunpack.c.l.bf16 %v205_v12  ;;  %v200_v16 = vunpack.c.h.bf16 %v205_v12  ;;  %v206_v26 = vld [vmem:[%s362_s2 + $0x10] sm:$0xff]  }
   0x6   :  { %v195_v15 = vunpack.c.l.bf16 %v194_v13  ;;  %v196_v17 = vunpack.c.h.bf16 %v194_v13  ;;  %v203_v31 = vunpack.c.l.bf16 %v206_v26  ;;  %v204_v32 = vunpack.c.h.bf16 %v206_v26 }
   0x7   :  { %255 = vmatpush3.bf16.msra.mxu1 %v265_v2  ;;  %221 = vmatpush3.bf16.msra.mxu0 %v265_v2 }
   0x8   :  { %248 = vmatprep.subr.bf16.mxu1 %v275_v0  ;;  %222 = vmatprep.subr.bf16.mxu0 %v275_v0 }
   0xb   :  { %256 = vmatpush3.bf16.msra.mxu1 %v266_v3  ;;  %223 = vmatpush3.bf16.msra.mxu0 %v266_v3 }
   0xc   :  { %249 = vmatprep.subr.bf16.mxu1 %v275_v0  ;;  %224 = vmatprep.subr.bf16.mxu0 %v275_v0 }
   0xf   :  { %257 = vmatpush3.bf16.msra.mxu1 %v267_v4  ;;  %225 = vmatpush3.bf16.msra.mxu0 %v267_v4 }
  0x10   :  { %250 = vmatprep.subr.bf16.mxu1 %v275_v0  ;;  %226 = vmatprep.subr.bf16.mxu0 %v275_v0 }
  0x13   :  { %258 = vmatpush3.bf16.msra.mxu1 %v268_v5  ;;  %227 = vmatpush3.bf16.msra.mxu0 %v268_v5 }
  0x14   :  { %251 = vmatprep.subr.bf16.mxu1 %v275_v0  ;;  %228 = vmatprep.subr.bf16.mxu0 %v275_v0 }
  0x17   :  { %259 = vmatpush3.bf16.msra.mxu1 %v269_v6  ;;  %229 = vmatpush3.bf16.msra.mxu0 %v269_v6 }
  0x18   :  { %252 = vmatprep.subr.bf16.mxu1 %v275_v0  ;;  %230 = vmatprep.subr.bf16.mxu0 %v275_v0 }
  0x1b   :  { %260 = vmatpush3.bf16.msra.mxu1 %v270_v7  ;;  %231 = vmatpush3.bf16.msra.mxu0 %v270_v7 }
  0x1c   :  { %253 = vmatprep.subr.bf16.mxu1 %v275_v0  ;;  %232 = vmatprep.subr.bf16.mxu0 %v275_v0 }
  0x1f   :  { %261 = vmatpush3.bf16.msra.mxu1 %v271_v8  ;;  %233 = vmatpush3.bf16.msra.mxu0 %v271_v8 }
  0x22   :  { %239 = vmatmul.mubr.bf16.vlgmr.msra.gmra.mrb[0].mxu1 %v272_v9  ;;  %235 = vmatmul.mubr.bf16.vlgmr.msra.gmra.mrb[0].mxu0 %v273_v10 }
  0x23   :  { %242 = vmatprep.mubr.msk.bf16.mxu1 %vm276_vm0, %v275_v0 }
  0x2a   :  { %243 = vmatmul.mubr.bf16.gmra.mrb[4].mxu1 %v274_v11 }
  0xf5   :  { %v157_v18 = vpop.f32.mrb[0].mxu1  ;;  %v149_v19 = vpop.f32.mrb[0].mxu0 }
  0xf6   :  { %v158_v20 = vadd.f32 %v199_v14, %v157_v18  ;;  %v240_v21 = vpop.f32.mrb[1].mxu1  ;;  %v150_v22 = vadd.f32 %v195_v15, %v149_v19  ;;  %v236_v23 = vpop.f32.mrb[1].mxu0 }
  0xf7   :  { %v160_v24 = vpop.f32.mrb[2].mxu1  ;;  %v152_v25 = vpop.f32.mrb[2].mxu0 }
  0xf8   :  { %174 = vst [vmem:[%s363_s3 + $0x10] sm:$0xff] %v158_v20  ;;  %v161_v27 = vadd.f32 %v200_v16, %v160_v24  ;;  %v241_v28 = vpop.f32.mrb[3].mxu1  ;;  %172 = vst [vmem:[%s363_s3] sm:$0xff] %v150_v22  ;;  %v153_v29 = vadd.f32 %v196_v17, %v152_v25  ;;  %v237_v30 = vpop.f32.mrb[3].mxu0 }
  0xfa   :  { %175 = vst [vmem:[%s363_s3 + $0x18] sm:$0xff] %v161_v27  ;;  %173 = vst [vmem:[%s363_s3 + $0x8] sm:$0xff] %v153_v29 }
  0xfd   :  { %v165_v33 = vpop.f32.mrb[4].mxu1 }
  0xfe   :  { %v166_v34 = vadd.f32 %v203_v31, %v165_v33  ;;  %v244_v35 = vpop.f32.mrb[5].mxu1 }
  0xff   :  { %v168_v36 = vpop.f32.mrb[6].mxu1 }
 0x100   :  { %176 = vst [vmem:[%s363_s3 + $0x20] sm:$0xff] %v166_v34  ;;  %v169_v37 = vadd.f32 %v204_v32, %v168_v36  ;;  %v245_v38 = vpop.f32.mrb[7].mxu1 }
 0x102   :  { %177 = vst [vmem:[%s363_s3 + $0x28] sm:$0xff] %v169_v37 }

</bundles_post_ra>
